<compile_context>
chip_gen: v5e
topology: v5e:2x2
jax: 0.10.0
libtpu: 0.0.40
codegen_flags: <defaults>
</compile_context>

<pallas_src>
import functools

import jax
import jax.numpy as jnp
from jax import lax
from jax.experimental import pallas as pl
from jax.experimental.pallas import tpu as pltpu

INPUT_DIM = 2
HIDDEN = 256


def _round_up(x, m):
    return (x + m - 1) // m * m


def _num_parallel_cores():
    """2 on v7x (two TensorCores share the 'parallel' grid axis), else 1."""
    try:
        kind = jax.devices()[0].device_kind.lower()
    except Exception:
        return 1
    return 2 if "v7" in kind else 1


def _coupling_kernel(x_ref,
                     s_w1, s_b1, s_wm, s_bm, s_w5, s_b5,
                     t_w1, t_b1, t_wm, t_bm, t_w5, t_b5,
                     s_out_ref, t_out_ref):
    x = x_ref[...]                              # [TILE_B, input_dim]
    input_dim = x.shape[-1]

    # ---- layer 1: K=input_dim is tiny -> do it on the VPU as broadcast FMAs.
    def layer1(w_ref, b_ref):
        w = w_ref[...]                          # [input_dim, HIDDEN]
        h = x[:, 0:1] * w[0:1, :]
        for d in range(1, input_dim):
            h = h + x[:, d:d + 1] * w[d:d + 1, :]
        return h + b_ref[...]                   # [TILE_B, HIDDEN], f32

    hs = layer1(s_w1, s_b1)
    ht = layer1(t_w1, t_b1)

    # ---- layers 2-4 pre-folded offline into one [HIDDEN, HIDDEN] per tower:
    # one MXU matmul each (K=N=256 matches the native MXU shape), f32 accum.
    wdt = s_wm.dtype                            # f32 or bf16 (flag-controlled)
    hs = jnp.dot(hs.astype(wdt), s_wm[...],
                 preferred_element_type=jnp.float32) + s_bm[...]
    ht = jnp.dot(ht.astype(wdt), t_wm[...],
                 preferred_element_type=jnp.float32) + t_bm[...]

    # ---- layer 5: two small matmuls written straight into the two outputs
    # (no [TILE_B, 2H] concat copy, no zero-block multiplies).
    s = jnp.dot(hs.astype(wdt), s_w5[...],
                preferred_element_type=jnp.float32) + s_b5[...]
    t = jnp.dot(ht.astype(wdt), t_w5[...],
                preferred_element_type=jnp.float32) + t_b5[...]
    s_out_ref[...] = s.astype(s_out_ref.dtype)
    t_out_ref[...] = t.astype(t_out_ref.dtype)


def init_coupling_params(key, input_dim=INPUT_DIM, hidden=HIDDEN,
                         dtype=jnp.float32):
    """Deterministic init mimicking PyTorch Linear (uniform +/- 1/sqrt(fan_in)).

    Returns a flat list [sW1, sb1, ..., sW5, sb5, tW1, tb1, ..., tW5, tb5]
    with W of shape [in, out] (so y = x @ W + b) and b of shape [1, out].
    """
    dims = [(input_dim, hidden), (hidden, hidden), (hidden, hidden),
            (hidden, hidden), (hidden, input_dim)]
    params = []
    for _tower in range(2):               # 0 = s-tower, 1 = t-tower
        for fan_in, fan_out in dims:
            key, kw, kb = jax.random.split(key, 3)
            bound = 1.0 / jnp.sqrt(jnp.asarray(fan_in, dtype))
            w = jax.random.uniform(kw, (fan_in, fan_out), dtype,
                                   minval=-bound, maxval=bound)
            b = jax.random.uniform(kb, (1, fan_out), dtype,
                                   minval=-bound, maxval=bound)
            params.append(w)
            params.append(b)
    return params


def _pack_params(params, use_bf16=False):
    """Pre-fold the activation-free layers 2-4 of each tower into a single
    [HIDDEN, HIDDEN] matrix + bias; layers 1 and 5 pass through unchanged."""
    (sW1, sb1, sW2, sb2, sW3, sb3, sW4, sb4, sW5, sb5,
     tW1, tb1, tW2, tb2, tW3, tb3, tW4, tb4, tW5, tb5) = params

    hp = lax.Precision.HIGHEST

    def fold_mid(W2, b2, W3, b3, W4, b4):
        W = jnp.dot(jnp.dot(W2, W3, precision=hp), W4, precision=hp)
        b = jnp.dot(jnp.dot(b2, W3, precision=hp) + b3, W4, precision=hp) + b4
        return W, b

    sWm, sbm = fold_mid(sW2, sb2, sW3, sb3, sW4, sb4)
    tWm, tbm = fold_mid(tW2, tb2, tW3, tb3, tW4, tb4)

    wdt = jnp.bfloat16 if use_bf16 else sW1.dtype
    packed = (sW1.astype(wdt), sb1, sWm.astype(wdt), sbm, sW5.astype(wdt), sb5,
              tW1.astype(wdt), tb1, tWm.astype(wdt), tbm, tW5.astype(wdt), tb5)
    return packed


@functools.partial(jax.jit, static_argnames=("tile_b", "use_bf16"))
def coupling_forward(x, params, tile_b=1024, use_bf16=False):
    """Pallas-backed forward: returns (s, t), each [batch, input_dim]."""
    batch, input_dim = x.shape
    hidden = params[2].shape[0]
    packed = _pack_params(params, use_bf16=use_bf16)

    # Batch tile: multiple of 8 (sublanes). Default 1024 to amortize the
    # ~0.35 us per-grid-step overhead; on v7x make sure there are >= 2
    # "parallel" grid steps so both TensorCores get work.
    num_cores = _num_parallel_cores()
    tb = min(tile_b, _round_up(batch, 8))
    padded = _round_up(batch, tb)
    if num_cores > 1 and padded // tb < num_cores and padded > 8:
        tb = _round_up(pl.cdiv(padded, num_cores), 8)
        padded = _round_up(batch, tb)
    if padded != batch:
        x = jnp.pad(x, ((0, padded - batch), (0, 0)))
    grid = (padded // tb,)

    x_spec = pl.BlockSpec((tb, input_dim), lambda i: (i, 0))
    out_spec = pl.BlockSpec((tb, input_dim), lambda i: (i, 0))
    # Weights/biases: full array, constant index_map -> fetched once, resident.
    w_specs = [pl.BlockSpec(p.shape, lambda i: (0, 0)) for p in packed]

    # Right-sized VMEM budget: resident params + double-buffered x/s/t tiles
    # + f32 activation scratch + headroom, capped at 32 MiB (v7x: 64 MiB/TC).
    itemsize = x.dtype.itemsize
    param_bytes = sum(int(p.size) * p.dtype.itemsize for p in packed)
    io_bytes = 2 * tb * input_dim * itemsize           # x tile, double-buffered
    io_bytes += 2 * 2 * tb * input_dim * itemsize      # s,t tiles, double-buf.
    act_bytes = 6 * tb * hidden * 4                    # f32 intermediates
    vmem_limit = min(param_bytes + io_bytes + act_bytes + (4 << 20), 32 << 20)

    s, t = pl.pallas_call(
        _coupling_kernel,
        out_shape=(jax.ShapeDtypeStruct((padded, input_dim), x.dtype),
                   jax.ShapeDtypeStruct((padded, input_dim), x.dtype)),
        grid=grid,
        in_specs=[x_spec] + w_specs,
        out_specs=(out_spec, out_spec),
        compiler_params=pltpu.CompilerParams(
            dimension_semantics=("parallel",),
            vmem_limit_bytes=int(vmem_limit)),
    )(x, *packed)

    return s[:batch], t[:batch]


def coupling_forward_ref(x, params):
    """Pure-JAX reference (same math as the PyTorch module)."""
    sw = params[0:10]
    tw = params[10:20]

    def tower(x, p):
        h = x
        for i in range(5):
            h = h @ p[2 * i] + p[2 * i + 1]
        return h

    return tower(x, sw), tower(x, tw)


if __name__ == "__main__":
    key = jax.random.PRNGKey(0)
    k_params, k_x = jax.random.split(key)

    params = init_coupling_params(k_params)
    batch = 16
    x = jax.random.normal(k_x, (batch, INPUT_DIM), dtype=jnp.float32)

    s, t = coupling_forward(x, params)
    s = jax.block_until_ready(s)
    t = jax.block_until_ready(t)

    s_ref, t_ref = coupling_forward_ref(x, params)
    assert s.shape == (batch, INPUT_DIM) and t.shape == (batch, INPUT_DIM)
    assert jnp.allclose(s, s_ref, atol=2e-4, rtol=2e-4), \
        float(jnp.max(jnp.abs(s - s_ref)))
    assert jnp.allclose(t, t_ref, atol=2e-4, rtol=2e-4), \
        float(jnp.max(jnp.abs(t - t_ref)))

    print("KERNEL_OK")
</pallas_src>

<mosaic_0001>
module attributes {stable_mosaic.version = 11 : i64} {
  func.func @_coupling_kernel(%arg0: i32, %arg1: memref<16x2xf32, #tpu.memory_space<vmem>>, %arg2: memref<2x256xf32, #tpu.memory_space<vmem>>, %arg3: memref<1x256xf32, #tpu.memory_space<vmem>>, %arg4: memref<256x256xf32, #tpu.memory_space<vmem>>, %arg5: memref<1x256xf32, #tpu.memory_space<vmem>>, %arg6: memref<256x2xf32, #tpu.memory_space<vmem>>, %arg7: memref<1x2xf32, #tpu.memory_space<vmem>>, %arg8: memref<2x256xf32, #tpu.memory_space<vmem>>, %arg9: memref<1x256xf32, #tpu.memory_space<vmem>>, %arg10: memref<256x256xf32, #tpu.memory_space<vmem>>, %arg11: memref<1x256xf32, #tpu.memory_space<vmem>>, %arg12: memref<256x2xf32, #tpu.memory_space<vmem>>, %arg13: memref<1x2xf32, #tpu.memory_space<vmem>>, %arg14: memref<16x2xf32, #tpu.memory_space<vmem>>, %arg15: memref<16x2xf32, #tpu.memory_space<vmem>>) attributes {dimension_semantics = [#tpu.dimension_semantics<parallel>], iteration_bounds = array<i64: 1>, scalar_prefetch = 0 : i64, scratch_operands = 0 : i64, tpu.core_type = #tpu.core_type<tc>, window_params = [{transform_indices = @transform_0, window_bounds = array<i64: 16, 2>}, {pipeline_mode = #tpu.pipeline_mode<synchronous>, transform_indices = @transform_1, window_bounds = array<i64: 2, 256>}, {pipeline_mode = #tpu.pipeline_mode<synchronous>, transform_indices = @transform_2, window_bounds = array<i64: 1, 256>}, {pipeline_mode = #tpu.pipeline_mode<synchronous>, transform_indices = @transform_3, window_bounds = array<i64: 256, 256>}, {pipeline_mode = #tpu.pipeline_mode<synchronous>, transform_indices = @transform_4, window_bounds = array<i64: 1, 256>}, {pipeline_mode = #tpu.pipeline_mode<synchronous>, transform_indices = @transform_5, window_bounds = array<i64: 256, 2>}, {pipeline_mode = #tpu.pipeline_mode<synchronous>, transform_indices = @transform_6, window_bounds = array<i64: 1, 2>}, {pipeline_mode = #tpu.pipeline_mode<synchronous>, transform_indices = @transform_7, window_bounds = array<i64: 2, 256>}, {pipeline_mode = #tpu.pipeline_mode<synchronous>, transform_indices = @transform_8, window_bounds = array<i64: 1, 256>}, {pipeline_mode = #tpu.pipeline_mode<synchronous>, transform_indices = @transform_9, window_bounds = array<i64: 256, 256>}, {pipeline_mode = #tpu.pipeline_mode<synchronous>, transform_indices = @transform_10, window_bounds = array<i64: 1, 256>}, {pipeline_mode = #tpu.pipeline_mode<synchronous>, transform_indices = @transform_11, window_bounds = array<i64: 256, 2>}, {pipeline_mode = #tpu.pipeline_mode<synchronous>, transform_indices = @transform_12, window_bounds = array<i64: 1, 2>}, {transform_indices = @transform_13, window_bounds = array<i64: 16, 2>}, {transform_indices = @transform_14, window_bounds = array<i64: 16, 2>}]} {
    %c0 = arith.constant 0 : index
    %c0_0 = arith.constant 0 : index
    %0 = vector.load %arg1[%c0, %c0_0] : memref<16x2xf32, #tpu.memory_space<vmem>>, vector<16x2xf32>
    %c0_1 = arith.constant 0 : index
    %c0_2 = arith.constant 0 : index
    %1 = vector.load %arg2[%c0_1, %c0_2] : memref<2x256xf32, #tpu.memory_space<vmem>>, vector<2x256xf32>
    %2 = vector.extract_strided_slice %0 {offsets = [0, 0], sizes = [16, 1], strides = [1, 1]} : vector<16x2xf32> to vector<16x1xf32>
    %3 = vector.extract_strided_slice %1 {offsets = [0, 0], sizes = [1, 256], strides = [1, 1]} : vector<2x256xf32> to vector<1x256xf32>
    %4 = vector.broadcast %2 : vector<16x1xf32> to vector<16x256xf32>
    %5 = vector.broadcast %3 : vector<1x256xf32> to vector<16x256xf32>
    %6 = arith.mulf %4, %5 : vector<16x256xf32>
    %7 = vector.extract_strided_slice %0 {offsets = [0, 1], sizes = [16, 1], strides = [1, 1]} : vector<16x2xf32> to vector<16x1xf32>
    %8 = vector.extract_strided_slice %1 {offsets = [1, 0], sizes = [1, 256], strides = [1, 1]} : vector<2x256xf32> to vector<1x256xf32>
    %9 = vector.broadcast %7 : vector<16x1xf32> to vector<16x256xf32>
    %10 = vector.broadcast %8 : vector<1x256xf32> to vector<16x256xf32>
    %11 = arith.mulf %9, %10 : vector<16x256xf32>
    %12 = arith.addf %6, %11 : vector<16x256xf32>
    %c0_3 = arith.constant 0 : index
    %c0_4 = arith.constant 0 : index
    %13 = vector.load %arg3[%c0_3, %c0_4] : memref<1x256xf32, #tpu.memory_space<vmem>>, vector<1x256xf32>
    %14 = vector.broadcast %13 : vector<1x256xf32> to vector<16x256xf32>
    %15 = arith.addf %12, %14 : vector<16x256xf32>
    %c0_5 = arith.constant 0 : index
    %c0_6 = arith.constant 0 : index
    %16 = vector.load %arg8[%c0_5, %c0_6] : memref<2x256xf32, #tpu.memory_space<vmem>>, vector<2x256xf32>
    %17 = vector.extract_strided_slice %0 {offsets = [0, 0], sizes = [16, 1], strides = [1, 1]} : vector<16x2xf32> to vector<16x1xf32>
    %18 = vector.extract_strided_slice %16 {offsets = [0, 0], sizes = [1, 256], strides = [1, 1]} : vector<2x256xf32> to vector<1x256xf32>
    %19 = vector.broadcast %17 : vector<16x1xf32> to vector<16x256xf32>
    %20 = vector.broadcast %18 : vector<1x256xf32> to vector<16x256xf32>
    %21 = arith.mulf %19, %20 : vector<16x256xf32>
    %22 = vector.extract_strided_slice %0 {offsets = [0, 1], sizes = [16, 1], strides = [1, 1]} : vector<16x2xf32> to vector<16x1xf32>
    %23 = vector.extract_strided_slice %16 {offsets = [1, 0], sizes = [1, 256], strides = [1, 1]} : vector<2x256xf32> to vector<1x256xf32>
    %24 = vector.broadcast %22 : vector<16x1xf32> to vector<16x256xf32>
    %25 = vector.broadcast %23 : vector<1x256xf32> to vector<16x256xf32>
    %26 = arith.mulf %24, %25 : vector<16x256xf32>
    %27 = arith.addf %21, %26 : vector<16x256xf32>
    %c0_7 = arith.constant 0 : index
    %c0_8 = arith.constant 0 : index
    %28 = vector.load %arg9[%c0_7, %c0_8] : memref<1x256xf32, #tpu.memory_space<vmem>>, vector<1x256xf32>
    %29 = vector.broadcast %28 : vector<1x256xf32> to vector<16x256xf32>
    %30 = arith.addf %27, %29 : vector<16x256xf32>
    %c0_9 = arith.constant 0 : index
    %c0_10 = arith.constant 0 : index
    %31 = vector.load %arg4[%c0_9, %c0_10] : memref<256x256xf32, #tpu.memory_space<vmem>>, vector<256x256xf32>
    %cst = arith.constant dense<0.000000e+00> : vector<16x256xf32>
    %32 = tpu.matmul %15, %31, %cst {dimension_numbers = #tpu.dot_dimension_numbers<[1], [0], [0], [1], [0, 0, 1, 1], [], []>} : vector<16x256xf32>, vector<256x256xf32>, vector<16x256xf32> -> vector<16x256xf32>
    %c0_11 = arith.constant 0 : index
    %c0_12 = arith.constant 0 : index
    %33 = vector.load %arg5[%c0_11, %c0_12] : memref<1x256xf32, #tpu.memory_space<vmem>>, vector<1x256xf32>
    %34 = vector.broadcast %33 : vector<1x256xf32> to vector<16x256xf32>
    %35 = arith.addf %32, %34 : vector<16x256xf32>
    %c0_13 = arith.constant 0 : index
    %c0_14 = arith.constant 0 : index
    %36 = vector.load %arg10[%c0_13, %c0_14] : memref<256x256xf32, #tpu.memory_space<vmem>>, vector<256x256xf32>
    %cst_15 = arith.constant dense<0.000000e+00> : vector<16x256xf32>
    %37 = tpu.matmul %30, %36, %cst_15 {dimension_numbers = #tpu.dot_dimension_numbers<[1], [0], [0], [1], [0, 0, 1, 1], [], []>} : vector<16x256xf32>, vector<256x256xf32>, vector<16x256xf32> -> vector<16x256xf32>
    %c0_16 = arith.constant 0 : index
    %c0_17 = arith.constant 0 : index
    %38 = vector.load %arg11[%c0_16, %c0_17] : memref<1x256xf32, #tpu.memory_space<vmem>>, vector<1x256xf32>
    %39 = vector.broadcast %38 : vector<1x256xf32> to vector<16x256xf32>
    %40 = arith.addf %37, %39 : vector<16x256xf32>
    %c0_18 = arith.constant 0 : index
    %c0_19 = arith.constant 0 : index
    %41 = vector.load %arg6[%c0_18, %c0_19] : memref<256x2xf32, #tpu.memory_space<vmem>>, vector<256x2xf32>
    %cst_20 = arith.constant dense<0.000000e+00> : vector<16x2xf32>
    %42 = tpu.matmul %35, %41, %cst_20 {dimension_numbers = #tpu.dot_dimension_numbers<[1], [0], [0], [1], [0, 0, 1, 1], [], []>} : vector<16x256xf32>, vector<256x2xf32>, vector<16x2xf32> -> vector<16x2xf32>
    %c0_21 = arith.constant 0 : index
    %c0_22 = arith.constant 0 : index
    %43 = vector.load %arg7[%c0_21, %c0_22] : memref<1x2xf32, #tpu.memory_space<vmem>>, vector<1x2xf32>
    %44 = vector.broadcast %43 : vector<1x2xf32> to vector<16x2xf32>
    %45 = arith.addf %42, %44 : vector<16x2xf32>
    %c0_23 = arith.constant 0 : index
    %c0_24 = arith.constant 0 : index
    %46 = vector.load %arg12[%c0_23, %c0_24] : memref<256x2xf32, #tpu.memory_space<vmem>>, vector<256x2xf32>
    %cst_25 = arith.constant dense<0.000000e+00> : vector<16x2xf32>
    %47 = tpu.matmul %40, %46, %cst_25 {dimension_numbers = #tpu.dot_dimension_numbers<[1], [0], [0], [1], [0, 0, 1, 1], [], []>} : vector<16x256xf32>, vector<256x2xf32>, vector<16x2xf32> -> vector<16x2xf32>
    %c0_26 = arith.constant 0 : index
    %c0_27 = arith.constant 0 : index
    %48 = vector.load %arg13[%c0_26, %c0_27] : memref<1x2xf32, #tpu.memory_space<vmem>>, vector<1x2xf32>
    %49 = vector.broadcast %48 : vector<1x2xf32> to vector<16x2xf32>
    %50 = arith.addf %47, %49 : vector<16x2xf32>
    %c0_28 = arith.constant 0 : index
    %c0_29 = arith.constant 0 : index
    %51 = vector.load %arg14[%c0_28, %c0_29] : memref<16x2xf32, #tpu.memory_space<vmem>>, vector<16x2xf32>
    tpu.vector_store %arg14[%c0_28, %c0_29], %45 {strides = array<i32>} : memref<16x2xf32, #tpu.memory_space<vmem>>, vector<16x2xf32>,
    %c0_30 = arith.constant 0 : index
    %c0_31 = arith.constant 0 : index
    %52 = vector.load %arg15[%c0_30, %c0_31] : memref<16x2xf32, #tpu.memory_space<vmem>>, vector<16x2xf32>
    tpu.vector_store %arg15[%c0_30, %c0_31], %50 {strides = array<i32>} : memref<16x2xf32, #tpu.memory_space<vmem>>, vector<16x2xf32>,
    return
  }
  func.func @transform_0(%arg0: i32) -> (i32, i32) {
    %c0_i32 = arith.constant 0 : i32
    %c0_i32_0 = arith.constant 0 : i32
    return %arg0, %c0_i32 : i32, i32
  }
  func.func @transform_1(%arg0: i32) -> (i32, i32) {
    %c0_i32 = arith.constant 0 : i32
    %c0_i32_0 = arith.constant 0 : i32
    %c0_i32_1 = arith.constant 0 : i32
    return %c0_i32, %c0_i32_0 : i32, i32
  }
  func.func @transform_2(%arg0: i32) -> (i32, i32) {
    %c0_i32 = arith.constant 0 : i32
    %c0_i32_0 = arith.constant 0 : i32
    %c0_i32_1 = arith.constant 0 : i32
    return %c0_i32, %c0_i32_0 : i32, i32
  }
  func.func @transform_3(%arg0: i32) -> (i32, i32) {
    %c0_i32 = arith.constant 0 : i32
    %c0_i32_0 = arith.constant 0 : i32
    %c0_i32_1 = arith.constant 0 : i32
    return %c0_i32, %c0_i32_0 : i32, i32
  }
  func.func @transform_4(%arg0: i32) -> (i32, i32) {
    %c0_i32 = arith.constant 0 : i32
    %c0_i32_0 = arith.constant 0 : i32
    %c0_i32_1 = arith.constant 0 : i32
    return %c0_i32, %c0_i32_0 : i32, i32
  }
  func.func @transform_5(%arg0: i32) -> (i32, i32) {
    %c0_i32 = arith.constant 0 : i32
    %c0_i32_0 = arith.constant 0 : i32
    %c0_i32_1 = arith.constant 0 : i32
    return %c0_i32, %c0_i32_0 : i32, i32
  }
  func.func @transform_6(%arg0: i32) -> (i32, i32) {
    %c0_i32 = arith.constant 0 : i32
    %c0_i32_0 = arith.constant 0 : i32
    %c0_i32_1 = arith.constant 0 : i32
    return %c0_i32, %c0_i32_0 : i32, i32
  }
  func.func @transform_7(%arg0: i32) -> (i32, i32) {
    %c0_i32 = arith.constant 0 : i32
    %c0_i32_0 = arith.constant 0 : i32
    %c0_i32_1 = arith.constant 0 : i32
    return %c0_i32, %c0_i32_0 : i32, i32
  }
  func.func @transform_8(%arg0: i32) -> (i32, i32) {
    %c0_i32 = arith.constant 0 : i32
    %c0_i32_0 = arith.constant 0 : i32
    %c0_i32_1 = arith.constant 0 : i32
    return %c0_i32, %c0_i32_0 : i32, i32
  }
  func.func @transform_9(%arg0: i32) -> (i32, i32) {
    %c0_i32 = arith.constant 0 : i32
    %c0_i32_0 = arith.constant 0 : i32
    %c0_i32_1 = arith.constant 0 : i32
    return %c0_i32, %c0_i32_0 : i32, i32
  }
  func.func @transform_10(%arg0: i32) -> (i32, i32) {
    %c0_i32 = arith.constant 0 : i32
    %c0_i32_0 = arith.constant 0 : i32
    %c0_i32_1 = arith.constant 0 : i32
    return %c0_i32, %c0_i32_0 : i32, i32
  }
  func.func @transform_11(%arg0: i32) -> (i32, i32) {
    %c0_i32 = arith.constant 0 : i32
    %c0_i32_0 = arith.constant 0 : i32
    %c0_i32_1 = arith.constant 0 : i32
    return %c0_i32, %c0_i32_0 : i32, i32
  }
  func.func @transform_12(%arg0: i32) -> (i32, i32) {
    %c0_i32 = arith.constant 0 : i32
    %c0_i32_0 = arith.constant 0 : i32
    %c0_i32_1 = arith.constant 0 : i32
    return %c0_i32, %c0_i32_0 : i32, i32
  }
  func.func @transform_13(%arg0: i32) -> (i32, i32) {
    %c0_i32 = arith.constant 0 : i32
    %c0_i32_0 = arith.constant 0 : i32
    return %arg0, %c0_i32 : i32, i32
  }
  func.func @transform_14(%arg0: i32) -> (i32, i32) {
    %c0_i32 = arith.constant 0 : i32
    %c0_i32_0 = arith.constant 0 : i32
    return %arg0, %c0_i32 : i32, i32
  }
}

</mosaic_0001>

<bundles_post_ra>
// kernel: coupling_forward.1
= control target key start
LH: loop header
LB: loop body
LE: loop exit
PB: predicated region body
PF: predicated region fallthrough
CT: control target
= control target key end

     0   :  { %v647_v0 = vmov 0   ;;  %v648_v19 = vmov 1   ;;  %vm626_vm0 = vcmask 15360   ;;  %s1364_s0 = inlined_call_operand.vmem [shape: f32[16,2], index: 0, kind: input, shape index: {}]   ;;  %s1365_s3 = inlined_call_operand.vmem [shape: f32[256,256], index: 3, kind: input, shape index: {}]   ;;  %s1366_s9 = inlined_call_operand.vmem [shape: f32[256,256], index: 9, kind: input, shape index: {}]   ;;  %s1367_s1 = inlined_call_operand.vmem [shape: f32[2,256], index: 1, kind: input, shape index: {}]   ;;  %s1368_s2 = inlined_call_operand.vmem [shape: f32[1,256], index: 2, kind: input, shape index: {}]   ;;  %s1369_s7 = inlined_call_operand.vmem [shape: f32[2,256], index: 7, kind: input, shape index: {}]   ;;  %s1370_s5 = inlined_call_operand.vmem [shape: f32[256,2], index: 5, kind: input, shape index: {}]   ;;  %s1371_s11 = inlined_call_operand.vmem [shape: f32[256,2], index: 11, kind: input, shape index: {}]   ;;  %s1372_s8 = inlined_call_operand.vmem [shape: f32[1,256], index: 8, kind: input, shape index: {}]   ;;  %s1373_s6 = inlined_call_operand.vmem [shape: f32[1,2], index: 6, kind: input, shape index: {}]   ;;  %s1374_s4 = inlined_call_operand.vmem [shape: f32[1,256], index: 4, kind: input, shape index: {}]   ;;  %s1375_s10 = inlined_call_operand.vmem [shape: f32[1,256], index: 10, kind: input, shape index: {}]   ;;  %s1376_s12 = inlined_call_operand.vmem [shape: f32[1,2], index: 12, kind: input, shape index: {}]   ;;  %s1377_s13 = inlined_call_operand.vmem [shape: f32[16,2], index: 13, kind: output, shape index: {0}]   ;;  %s1378_s14 = inlined_call_operand.vmem [shape: f32[16,2], index: 14, kind: output, shape index: {1}]  }
   0x1   :  { %643 = vset.pattern.permute.xlu1 %v647_v0  ;;  %641 = vset.pattern.permute.xlu0 %v647_v0  ;;  %v47_v1 = vld [vmem:[%s1364_s0 + $0x8] sm:$0xff]  ;;  %v46_v2 = vld [vmem:[%s1364_s0] sm:$0xff]  ;;  %v168_v3 = vld [vmem:[%s1365_s3 + $0xf0] sm:$0xff] }
   0x2   :  { %56 = vperm.xlu1 %643, %v47_v1   ;;  %51 = vperm.xlu0 %641, %v46_v2   ;;  %v200_v4 = vld [vmem:[%s1365_s3 + $0x1f0] sm:$0xff]  ;;  %v169_v5 = vld [vmem:[%s1365_s3 + $0xf8] sm:$0xff]  ;;  %v166_v7 = vld [vmem:[%s1365_s3 + $0xe0] sm:$0xff] }
   0x3   :  { %v201_v6 = vld [vmem:[%s1365_s3 + $0x1f8] sm:$0xff]  ;;  %208 = vmatpush.msra.mxu0 %v168_v3  ;;  %231 = vmatpush.msra.mxu1 %v200_v4  ;;  %v198_v8 = vld [vmem:[%s1365_s3 + $0x1e0] sm:$0xff]  ;;  %v167_v9 = vld [vmem:[%s1365_s3 + $0xe8] sm:$0xff] }
   0x4   :  { %254 = vmatpush.msra.mxu2 %v169_v5  ;;  %277 = vmatpush.msra.mxu3 %v201_v6  ;;  %v199_v10 = vld [vmem:[%s1365_s3 + $0x1e8] sm:$0xff]  ;;  %v164_v11 = vld [vmem:[%s1365_s3 + $0xd0] sm:$0xff]  ;;  %v165_v13 = vld [vmem:[%s1365_s3 + $0xd8] sm:$0xff] }
   0x5   :  { %v196_v12 = vld [vmem:[%s1365_s3 + $0x1d0] sm:$0xff]  ;;  %209 = vmatpush.msra.mxu0 %v166_v7  ;;  %232 = vmatpush.msra.mxu1 %v198_v8  ;;  %v197_v14 = vld [vmem:[%s1365_s3 + $0x1d8] sm:$0xff]  ;;  %v162_v15 = vld [vmem:[%s1365_s3 + $0xc0] sm:$0xff] }
   0x6   :  { %255 = vmatpush.msra.mxu2 %v167_v9  ;;  %278 = vmatpush.msra.mxu3 %v199_v10  ;;  %v194_v16 = vld [vmem:[%s1365_s3 + $0x1c0] sm:$0xff]  ;;  %v163_v17 = vld [vmem:[%s1365_s3 + $0xc8] sm:$0xff]  ;;  %v160_v20 = vld [vmem:[%s1365_s3 + $0xb0] sm:$0xff] }
   0x7   :  { %210 = vmatpush.msra.mxu0 %v164_v11  ;;  %233 = vmatpush.msra.mxu1 %v196_v12  ;;  %v195_v18 = vld [vmem:[%s1365_s3 + $0x1c8] sm:$0xff]  ;;  %v192_v21 = vld [vmem:[%s1365_s3 + $0x1b0] sm:$0xff]  ;;  %v161_v22 = vld [vmem:[%s1365_s3 + $0xb8] sm:$0xff] }
   0x8   :  { %256 = vmatpush.msra.mxu2 %v165_v13  ;;  %279 = vmatpush.msra.mxu3 %v197_v14  ;;  %v193_v23 = vld [vmem:[%s1365_s3 + $0x1b8] sm:$0xff]  ;;  %v158_v24 = vld [vmem:[%s1365_s3 + $0xa0] sm:$0xff]  ;;  %v159_v26 = vld [vmem:[%s1365_s3 + $0xa8] sm:$0xff] }
   0x9   :  { %211 = vmatpush.msra.mxu0 %v162_v15  ;;  %234 = vmatpush.msra.mxu1 %v194_v16  ;;  %v190_v25 = vld [vmem:[%s1365_s3 + $0x1a0] sm:$0xff]  ;;  %v191_v27 = vld [vmem:[%s1365_s3 + $0x1a8] sm:$0xff]  ;;  %v156_v28 = vld [vmem:[%s1365_s3 + $0x90] sm:$0xff] }
   0xa   :  { %644 = vset.pattern.permute.xlu1 %v648_v19  ;;  %642 = vset.pattern.permute.xlu0 %v648_v19  ;;  %v188_v29 = vld [vmem:[%s1365_s3 + $0x190] sm:$0xff]  ;;  %v157_v30 = vld [vmem:[%s1365_s3 + $0x98] sm:$0xff]  ;;  %v154_v32 = vld [vmem:[%s1365_s3 + $0x80] sm:$0xff] }
   0xb   :  { %75 = vperm.xlu1 %644, %v47_v1   ;;  %71 = vperm.xlu0 %642, %v46_v2   ;;  %v189_v31 = vld [vmem:[%s1365_s3 + $0x198] sm:$0xff]  ;;  %v186_v33 = vld [vmem:[%s1365_s3 + $0x180] sm:$0xff]  ;;  %v155_v34 = vld [vmem:[%s1365_s3 + $0x88] sm:$0xff] }
   0xc   :  { %257 = vmatpush.msra.mxu2 %v163_v17  ;;  %280 = vmatpush.msra.mxu3 %v195_v18  ;;  %v187_v35 = vld [vmem:[%s1365_s3 + $0x188] sm:$0xff]  ;;  %v152_v36 = vld [vmem:[%s1365_s3 + $0x70] sm:$0xff]  ;;  %v153_v38 = vld [vmem:[%s1365_s3 + $0x78] sm:$0xff] }
   0xd   :  { %212 = vmatpush.msra.mxu0 %v160_v20  ;;  %235 = vmatpush.msra.mxu1 %v192_v21  ;;  %v184_v37 = vld [vmem:[%s1365_s3 + $0x170] sm:$0xff]  ;;  %v185_v39 = vld [vmem:[%s1365_s3 + $0x178] sm:$0xff]  ;;  %v150_v40 = vld [vmem:[%s1365_s3 + $0x60] sm:$0xff] }
   0xe   :  { %258 = vmatpush.msra.mxu2 %v161_v22  ;;  %281 = vmatpush.msra.mxu3 %v193_v23  ;;  %v182_v41 = vld [vmem:[%s1365_s3 + $0x160] sm:$0xff]  ;;  %v151_v42 = vld [vmem:[%s1365_s3 + $0x68] sm:$0xff]  ;;  %v148_v44 = vld [vmem:[%s1365_s3 + $0x50] sm:$0xff] }
   0xf   :  { %213 = vmatpush.msra.mxu0 %v158_v24  ;;  %236 = vmatpush.msra.mxu1 %v190_v25  ;;  %v183_v43 = vld [vmem:[%s1365_s3 + $0x168] sm:$0xff]  ;;  %v180_v45 = vld [vmem:[%s1365_s3 + $0x150] sm:$0xff]  ;;  %v149_v46 = vld [vmem:[%s1365_s3 + $0x58] sm:$0xff] }
  0x10   :  { %259 = vmatpush.msra.mxu2 %v159_v26  ;;  %282 = vmatpush.msra.mxu3 %v191_v27  ;;  %v181_v47 = vld [vmem:[%s1365_s3 + $0x158] sm:$0xff]  ;;  %v146_v48 = vld [vmem:[%s1365_s3 + $0x40] sm:$0xff]  ;;  %v147_v50 = vld [vmem:[%s1365_s3 + $0x48] sm:$0xff] }
  0x11   :  { %214 = vmatpush.msra.mxu0 %v156_v28  ;;  %237 = vmatpush.msra.mxu1 %v188_v29  ;;  %v178_v49 = vld [vmem:[%s1365_s3 + $0x140] sm:$0xff]  ;;  %v179_v51 = vld [vmem:[%s1365_s3 + $0x148] sm:$0xff]  ;;  %v144_v52 = vld [vmem:[%s1365_s3 + $0x30] sm:$0xff] }
  0x12   :  { %260 = vmatpush.msra.mxu2 %v157_v30  ;;  %283 = vmatpush.msra.mxu3 %v189_v31  ;;  %v176_v53 = vld [vmem:[%s1365_s3 + $0x130] sm:$0xff]  ;;  %v145_v54 = vld [vmem:[%s1365_s3 + $0x38] sm:$0xff]  ;;  %v142_v56 = vld [vmem:[%s1365_s3 + $0x20] sm:$0xff] }
  0x13   :  { %215 = vmatpush.msra.mxu0 %v154_v32  ;;  %238 = vmatpush.msra.mxu1 %v186_v33  ;;  %v177_v55 = vld [vmem:[%s1365_s3 + $0x138] sm:$0xff]  ;;  %v174_v57 = vld [vmem:[%s1365_s3 + $0x120] sm:$0xff]  ;;  %v143_v58 = vld [vmem:[%s1365_s3 + $0x28] sm:$0xff] }
  0x14   :  { %261 = vmatpush.msra.mxu2 %v155_v34  ;;  %284 = vmatpush.msra.mxu3 %v187_v35  ;;  %v175_v59 = vld [vmem:[%s1365_s3 + $0x128] sm:$0xff]  ;;  %v140_v60 = vld [vmem:[%s1365_s3 + $0x10] sm:$0xff]  ;;  %v141_v62 = vld [vmem:[%s1365_s3 + $0x18] sm:$0xff] }
  0x15   :  { %216 = vmatpush.msra.mxu0 %v152_v36  ;;  %239 = vmatpush.msra.mxu1 %v184_v37  ;;  %v172_v61 = vld [vmem:[%s1365_s3 + $0x110] sm:$0xff]  ;;  %v173_v63 = vld [vmem:[%s1365_s3 + $0x118] sm:$0xff]  ;;  %v138_v0 = vld [vmem:[%s1365_s3] sm:$0xff] }
  0x16   :  { %262 = vmatpush.msra.mxu2 %v153_v38  ;;  %285 = vmatpush.msra.mxu3 %v185_v39  ;;  %v170_v1 = vld [vmem:[%s1365_s3 + $0x100] sm:$0xff]  ;;  %v139_v2 = vld [vmem:[%s1365_s3 + $0x8] sm:$0xff]  ;;  %v330_v4 = vld [vmem:[%s1366_s9 + $0xf0] sm:$0xff] }
  0x17   :  { %217 = vmatpush.msra.mxu0 %v150_v40  ;;  %240 = vmatpush.msra.mxu1 %v182_v41  ;;  %v171_v3 = vld [vmem:[%s1365_s3 + $0x108] sm:$0xff]  ;;  %v362_v5 = vld [vmem:[%s1366_s9 + $0x1f0] sm:$0xff]  ;;  %v331_v6 = vld [vmem:[%s1366_s9 + $0xf8] sm:$0xff] }
  0x18   :  { %263 = vmatpush.msra.mxu2 %v151_v42  ;;  %286 = vmatpush.msra.mxu3 %v183_v43  ;;  %v363_v7 = vld [vmem:[%s1366_s9 + $0x1f8] sm:$0xff]  ;;  %v328_v8 = vld [vmem:[%s1366_s9 + $0xe0] sm:$0xff]  ;;  %v329_v10 = vld [vmem:[%s1366_s9 + $0xe8] sm:$0xff] }
  0x19   :  { %218 = vmatpush.msra.mxu0 %v148_v44  ;;  %241 = vmatpush.msra.mxu1 %v180_v45  ;;  %v360_v9 = vld [vmem:[%s1366_s9 + $0x1e0] sm:$0xff]  ;;  %v361_v11 = vld [vmem:[%s1366_s9 + $0x1e8] sm:$0xff]  ;;  %v326_v12 = vld [vmem:[%s1366_s9 + $0xd0] sm:$0xff] }
  0x1a   :  { %264 = vmatpush.msra.mxu2 %v149_v46  ;;  %287 = vmatpush.msra.mxu3 %v181_v47  ;;  %v358_v13 = vld [vmem:[%s1366_s9 + $0x1d0] sm:$0xff]  ;;  %v327_v14 = vld [vmem:[%s1366_s9 + $0xd8] sm:$0xff]  ;;  %v324_v16 = vld [vmem:[%s1366_s9 + $0xc0] sm:$0xff] }
  0x1b   :  { %219 = vmatpush.msra.mxu0 %v146_v48  ;;  %242 = vmatpush.msra.mxu1 %v178_v49  ;;  %v359_v15 = vld [vmem:[%s1366_s9 + $0x1d8] sm:$0xff]  ;;  %v356_v17 = vld [vmem:[%s1366_s9 + $0x1c0] sm:$0xff]  ;;  %v325_v18 = vld [vmem:[%s1366_s9 + $0xc8] sm:$0xff] }
  0x1c   :  { %265 = vmatpush.msra.mxu2 %v147_v50  ;;  %288 = vmatpush.msra.mxu3 %v179_v51  ;;  %v357_v19 = vld [vmem:[%s1366_s9 + $0x1c8] sm:$0xff]  ;;  %v322_v20 = vld [vmem:[%s1366_s9 + $0xb0] sm:$0xff]  ;;  %v323_v22 = vld [vmem:[%s1366_s9 + $0xb8] sm:$0xff] }
  0x1d   :  { %220 = vmatpush.msra.mxu0 %v144_v52  ;;  %243 = vmatpush.msra.mxu1 %v176_v53  ;;  %v354_v21 = vld [vmem:[%s1366_s9 + $0x1b0] sm:$0xff]  ;;  %v355_v23 = vld [vmem:[%s1366_s9 + $0x1b8] sm:$0xff]  ;;  %v320_v24 = vld [vmem:[%s1366_s9 + $0xa0] sm:$0xff] }
  0x1e   :  { %266 = vmatpush.msra.mxu2 %v145_v54  ;;  %289 = vmatpush.msra.mxu3 %v177_v55  ;;  %v352_v25 = vld [vmem:[%s1366_s9 + $0x1a0] sm:$0xff]  ;;  %v321_v26 = vld [vmem:[%s1366_s9 + $0xa8] sm:$0xff]  ;;  %v318_v28 = vld [vmem:[%s1366_s9 + $0x90] sm:$0xff] }
  0x1f   :  { %221 = vmatpush.msra.mxu0 %v142_v56  ;;  %244 = vmatpush.msra.mxu1 %v174_v57  ;;  %v353_v27 = vld [vmem:[%s1366_s9 + $0x1a8] sm:$0xff]  ;;  %v350_v29 = vld [vmem:[%s1366_s9 + $0x190] sm:$0xff]  ;;  %v319_v30 = vld [vmem:[%s1366_s9 + $0x98] sm:$0xff] }
  0x20   :  { %267 = vmatpush.msra.mxu2 %v143_v58  ;;  %290 = vmatpush.msra.mxu3 %v175_v59  ;;  %v351_v31 = vld [vmem:[%s1366_s9 + $0x198] sm:$0xff]  ;;  %v316_v32 = vld [vmem:[%s1366_s9 + $0x80] sm:$0xff]  ;;  %v317_v34 = vld [vmem:[%s1366_s9 + $0x88] sm:$0xff] }
  0x21   :  { %222 = vmatpush.msra.mxu0 %v140_v60  ;;  %245 = vmatpush.msra.mxu1 %v172_v61  ;;  %v348_v33 = vld [vmem:[%s1366_s9 + $0x180] sm:$0xff]  ;;  %v349_v35 = vld [vmem:[%s1366_s9 + $0x188] sm:$0xff]  ;;  %v314_v36 = vld [vmem:[%s1366_s9 + $0x70] sm:$0xff] }
  0x22   :  { %268 = vmatpush.msra.mxu2 %v141_v62  ;;  %291 = vmatpush.msra.mxu3 %v173_v63  ;;  %v346_v37 = vld [vmem:[%s1366_s9 + $0x170] sm:$0xff]  ;;  %v315_v38 = vld [vmem:[%s1366_s9 + $0x78] sm:$0xff]  ;;  %v312_v40 = vld [vmem:[%s1366_s9 + $0x60] sm:$0xff] }
  0x23   :  { %223 = vmatpush.msra.mxu0 %v138_v0  ;;  %246 = vmatpush.msra.mxu1 %v170_v1  ;;  %v347_v39 = vld [vmem:[%s1366_s9 + $0x178] sm:$0xff]  ;;  %v344_v41 = vld [vmem:[%s1366_s9 + $0x160] sm:$0xff]  ;;  %v313_v42 = vld [vmem:[%s1366_s9 + $0x68] sm:$0xff] }
  0x24   :  { %269 = vmatpush.msra.mxu2 %v139_v2  ;;  %292 = vmatpush.msra.mxu3 %v171_v3  ;;  %v345_v43 = vld [vmem:[%s1366_s9 + $0x168] sm:$0xff]  ;;  %v310_v44 = vld [vmem:[%s1366_s9 + $0x50] sm:$0xff]  ;;  %v311_v46 = vld [vmem:[%s1366_s9 + $0x58] sm:$0xff] }
  0x25   :  { %370 = vmatpush.msrb.mxu0 %v330_v4  ;;  %393 = vmatpush.msrb.mxu1 %v362_v5  ;;  %v342_v45 = vld [vmem:[%s1366_s9 + $0x150] sm:$0xff]  ;;  %v343_v47 = vld [vmem:[%s1366_s9 + $0x158] sm:$0xff]  ;;  %v308_v48 = vld [vmem:[%s1366_s9 + $0x40] sm:$0xff] }
  0x26   :  { %416 = vmatpush.msrb.mxu2 %v331_v6  ;;  %439 = vmatpush.msrb.mxu3 %v363_v7  ;;  %v340_v49 = vld [vmem:[%s1366_s9 + $0x140] sm:$0xff]  ;;  %v309_v50 = vld [vmem:[%s1366_s9 + $0x48] sm:$0xff]  ;;  %v306_v52 = vld [vmem:[%s1366_s9 + $0x30] sm:$0xff] }
  0x27   :  { %371 = vmatpush.msrb.mxu0 %v328_v8  ;;  %394 = vmatpush.msrb.mxu1 %v360_v9  ;;  %v341_v51 = vld [vmem:[%s1366_s9 + $0x148] sm:$0xff]  ;;  %v338_v53 = vld [vmem:[%s1366_s9 + $0x130] sm:$0xff]  ;;  %v307_v54 = vld [vmem:[%s1366_s9 + $0x38] sm:$0xff] }
  0x28   :  { %417 = vmatpush.msrb.mxu2 %v329_v10  ;;  %440 = vmatpush.msrb.mxu3 %v361_v11  ;;  %v339_v55 = vld [vmem:[%s1366_s9 + $0x138] sm:$0xff]  ;;  %v304_v56 = vld [vmem:[%s1366_s9 + $0x20] sm:$0xff]  ;;  %v305_v58 = vld [vmem:[%s1366_s9 + $0x28] sm:$0xff] }
  0x29   :  { %372 = vmatpush.msrb.mxu0 %v326_v12  ;;  %395 = vmatpush.msrb.mxu1 %v358_v13  ;;  %v336_v57 = vld [vmem:[%s1366_s9 + $0x120] sm:$0xff]  ;;  %v337_v59 = vld [vmem:[%s1366_s9 + $0x128] sm:$0xff]  ;;  %v302_v60 = vld [vmem:[%s1366_s9 + $0x10] sm:$0xff] }
  0x2a   :  { %418 = vmatpush.msrb.mxu2 %v327_v14  ;;  %441 = vmatpush.msrb.mxu3 %v359_v15  ;;  %v334_v61 = vld [vmem:[%s1366_s9 + $0x110] sm:$0xff]  ;;  %v303_v62 = vld [vmem:[%s1366_s9 + $0x18] sm:$0xff]  ;;  %v300_v0 = vld [vmem:[%s1366_s9] sm:$0xff] }
  0x2b   :  { %373 = vmatpush.msrb.mxu0 %v324_v16  ;;  %396 = vmatpush.msrb.mxu1 %v356_v17  ;;  %v335_v63 = vld [vmem:[%s1366_s9 + $0x118] sm:$0xff]  ;;  %v332_v1 = vld [vmem:[%s1366_s9 + $0x100] sm:$0xff]  ;;  %v301_v2 = vld [vmem:[%s1366_s9 + $0x8] sm:$0xff] }
  0x2c   :  { %419 = vmatpush.msrb.mxu2 %v325_v18  ;;  %442 = vmatpush.msrb.mxu3 %v357_v19  ;;  %v48_v4 = vld [vmem:[%s1367_s1] sm:$0xf]  ;;  %v333_v5 = vld [vmem:[%s1366_s9 + $0x108] sm:$0xff] }
  0x2d   :  { %374 = vmatpush.msrb.mxu0 %v322_v20  ;;  %397 = vmatpush.msrb.mxu1 %v354_v21  ;;  %v78_v7 = vperm.slane %v48_v4, 1  ;;  %v79_v8 = vperm.slane %v48_v4, 3  ;;  %v60_v9 = vperm.slane %v48_v4, 0  ;;  %v61_v10 = vperm.slane %v48_v4, 2  ;;  %v92_v14 = vld [vmem:[%s1368_s2] sm:$0x3] }
  0x2e   :  { %420 = vmatpush.msrb.mxu2 %v323_v22  ;;  %443 = vmatpush.msrb.mxu3 %v355_v23  ;;  %v94_v17 = vperm.slane %v92_v14, 0  ;;  %v95_v18 = vperm.slane %v92_v14, 1 }
  0x2f   :  { %375 = vmatpush.msrb.mxu0 %v320_v24  ;;  %398 = vmatpush.msrb.mxu1 %v352_v25  ;;  %v82_v11 = vperm.slane %v78_v7, 1  ;;  %v83_v12 = vperm.slane %v79_v8, 1  ;;  %v64_v13 = vperm.slane %v60_v9, 0  ;;  %v65_v15 = vperm.slane %v61_v10, 0  ;;  %v102_v24 = vld [vmem:[%s1369_s7] sm:$0xf] }
  0x30   :  { %421 = vmatpush.msrb.mxu2 %v321_v26  ;;  %444 = vmatpush.msrb.mxu3 %v353_v27  ;;  %v114_v27 = vperm.slane %v102_v24, 1  ;;  %v555_v7 = vld [vmem:[%s1371_s11 + $0x58] sm:$0xff]  ;;  %v472_v8 = vld [vmem:[%s1370_s5 + $0x50] sm:$0xff] }
  0x31   :  { %376 = vmatpush.msrb.mxu0 %v318_v28  ;;  %399 = vmatpush.msrb.mxu1 %v350_v29  ;;  %v115_v28 = vperm.slane %v102_v24, 3  ;;  %v488_v9 = vld [vmem:[%s1370_s5 + $0xd0] sm:$0xff] }
  0x32   :  { %422 = vmatpush.msrb.mxu2 %v319_v30  ;;  %445 = vmatpush.msrb.mxu3 %v351_v31 }
  0x33   :  { %377 = vmatpush.msrb.mxu0 %v316_v32  ;;  %400 = vmatpush.msrb.mxu1 %v348_v33 }
  0x34   :  { %423 = vmatpush.msrb.mxu2 %v317_v34  ;;  %446 = vmatpush.msrb.mxu3 %v349_v35  ;;  %v477_v35 = vld [vmem:[%s1370_s5 + $0x78] sm:$0xff] }
  0x35   :  { %378 = vmatpush.msrb.mxu0 %v314_v36  ;;  %401 = vmatpush.msrb.mxu1 %v346_v37  ;;  %v493_v36 = vld [vmem:[%s1370_s5 + $0xf8] sm:$0xff]  ;;  %v104_v37 = vperm.slane %v102_v24, 0 }
  0x36   :  { %424 = vmatpush.msrb.mxu2 %v315_v38  ;;  %447 = vmatpush.msrb.mxu3 %v347_v39  ;;  %v105_v38 = vperm.slane %v102_v24, 2  ;;  %v559_v39 = vld [vmem:[%s1371_s11 + $0x78] sm:$0xff] }
  0x37   :  { %379 = vmatpush.msrb.mxu0 %v312_v40  ;;  %402 = vmatpush.msrb.mxu1 %v344_v41  ;;  %v118_v40 = vperm.slane %v114_v27, 1  ;;  %v476_v41 = vld [vmem:[%s1370_s5 + $0x70] sm:$0xff]  ;;  %v467_v27 = vld [vmem:[%s1370_s5 + $0x28] sm:$0xff] }
  0x38   :  { %425 = vmatpush.msrb.mxu2 %v313_v42  ;;  %448 = vmatpush.msrb.mxu3 %v345_v43  ;;  %v492_v42 = vld [vmem:[%s1370_s5 + $0xf0] sm:$0xff]  ;;  %v575_v43 = vld [vmem:[%s1371_s11 + $0xf8] sm:$0xff] }
  0x39   :  { %380 = vmatpush.msrb.mxu0 %v310_v44  ;;  %403 = vmatpush.msrb.mxu1 %v342_v45  ;;  %v119_v44 = vperm.slane %v115_v28, 1  ;;  %v466_v28 = vld [vmem:[%s1370_s5 + $0x20] sm:$0xff] }
  0x3a   :  { %426 = vmatpush.msrb.mxu2 %v311_v46  ;;  %449 = vmatpush.msrb.mxu3 %v343_v47  ;;  %v558_v47 = vld [vmem:[%s1371_s11 + $0x70] sm:$0xff] }
  0x3b   :  { %381 = vmatpush.msrb.mxu0 %v308_v48  ;;  %404 = vmatpush.msrb.mxu1 %v340_v49  ;;  %v574_v48 = vld [vmem:[%s1371_s11 + $0xf0] sm:$0xff]  ;;  %v475_v49 = vld [vmem:[%s1370_s5 + $0x68] sm:$0xff] }
  0x3c   :  { %427 = vmatpush.msrb.mxu2 %v309_v50  ;;  %450 = vmatpush.msrb.mxu3 %v341_v51  ;;  %v491_v50 = vld [vmem:[%s1370_s5 + $0xe8] sm:$0xff]  ;;  %v108_v51 = vperm.slane %v104_v37, 0  ;;  %v572_v37 = vld [vmem:[%s1371_s11 + $0xe0] sm:$0xff] }
  0x3d   :  { %382 = vmatpush.msrb.mxu0 %v306_v52  ;;  %405 = vmatpush.msrb.mxu1 %v338_v53  ;;  %v109_v52 = vperm.slane %v105_v38, 0  ;;  %v557_v53 = vld [vmem:[%s1371_s11 + $0x68] sm:$0xff]  ;;  %v462_v38 = vld [vmem:[%s1370_s5] sm:$0xff] }
  0x3e   :  { %428 = vmatpush.msrb.mxu2 %v307_v54  ;;  %451 = vmatpush.msrb.mxu3 %v339_v55 }
  0x3f   :  { %383 = vmatpush.msrb.mxu0 %v304_v56  ;;  %406 = vmatpush.msrb.mxu1 %v336_v57 }
  0x40   :  { %429 = vmatpush.msrb.mxu2 %v305_v58  ;;  %452 = vmatpush.msrb.mxu3 %v337_v59  ;;  %v128_v58 = vld [vmem:[%s1372_s8] sm:$0x3] }
  0x41   :  { %384 = vmatpush.msrb.mxu0 %v302_v60  ;;  %407 = vmatpush.msrb.mxu1 %v334_v61  ;;  %v474_v59 = vld [vmem:[%s1370_s5 + $0x60] sm:$0xff] }
  0x42   :  { %430 = vmatpush.msrb.mxu2 %v303_v62  ;;  %453 = vmatpush.msrb.mxu3 %v335_v63  ;;  %v490_v60 = vld [vmem:[%s1370_s5 + $0xe0] sm:$0xff] }
  0x43   :  { %385 = vmatpush.msrb.mxu0 %v300_v0  ;;  %408 = vmatpush.msrb.mxu1 %v332_v1  ;;  %v556_v63 = vld [vmem:[%s1371_s11 + $0x60] sm:$0xff]  ;;  %v473_v0 = vld [vmem:[%s1370_s5 + $0x58] sm:$0xff] }
  0x44   :  { %431 = vmatpush.msrb.mxu2 %v301_v2  ;;  %454 = vmatpush.msrb.mxu3 %v333_v5  ;;  %v489_v1 = vld [vmem:[%s1370_s5 + $0xd8] sm:$0xff]  ;;  %v130_v5 = vperm.slane %v128_v58, 0 }
  0x74   :  { %v1111_v3 = vpop.permute.xlu0 %51  ;;  %v1119_v6 = vpop.permute.xlu1 %56 }
  0x75   :  { %v66_v21 = vmul.f32 %v64_v13, %v1111_v3  ;;  %v67_v22 = vmul.f32 %v65_v15, %v1111_v3  ;;  %v68_v29 = vmul.f32 %v64_v13, %v1119_v6  ;;  %v69_v30 = vmul.f32 %v65_v15, %v1119_v6 }
  0x76   :  { %v110_v61 = vmul.f32 %v108_v51, %v1111_v3  ;;  %v111_v62 = vmul.f32 %v109_v52, %v1111_v3  ;;  %v131_v3 = vperm.slane %v128_v58, 1  ;;  %v564_v58 = vld [vmem:[%s1371_s11 + $0xa0] sm:$0xff] }
  0x7d   :  { %v72_v16 = vpop.permute.xlu0 %71  ;;  %v1126_v23 = vpop.permute.xlu1 %75 }
  0x7e   :  { %v84_v19 = vmul.f32 %v82_v11, %v72_v16  ;;  %v85_v20 = vmul.f32 %v83_v12, %v72_v16  ;;  %v86_v31 = vmul.f32 %v82_v11, %v1126_v23  ;;  %v87_v32 = vmul.f32 %v83_v12, %v1126_v23 }
  0x7f   :  { %v120_v54 = vmul.f32 %v118_v40, %v72_v16  ;;  %v121_v55 = vmul.f32 %v119_v44, %v72_v16  ;;  %v122_v10 = vmul.f32 %v118_v40, %v1126_v23  ;;  %v112_v11 = vmul.f32 %v108_v51, %v1119_v6  ;;  %v471_v16 = vld [vmem:[%s1370_s5 + $0x48] sm:$0xff]  ;;  %v552_v40 = vld [vmem:[%s1371_s11 + $0x40] sm:$0xff] }
  0x80   :  { %v88_v25 = vadd.f32 %v84_v19, %v66_v21  ;;  %v89_v26 = vadd.f32 %v85_v20, %v67_v22  ;;  %v90_v45 = vadd.f32 %v86_v31, %v68_v29  ;;  %v91_v46 = vadd.f32 %v87_v32, %v69_v30  ;;  %v469_v21 = vld [vmem:[%s1370_s5 + $0x38] sm:$0xff]  ;;  %v464_v30 = vld [vmem:[%s1370_s5 + $0x10] sm:$0xff]  ;;  %v483_v31 = vld [vmem:[%s1370_s5 + $0xa8] sm:$0xff] }
  0x81   :  { %v124_v2 = vadd.f32 %v120_v54, %v110_v61  ;;  %v125_v4 = vadd.f32 %v121_v55, %v111_v62  ;;  %v113_v12 = vmul.f32 %v109_v52, %v1119_v6  ;;  %v123_v13 = vmul.f32 %v119_v44, %v1126_v23  ;;  %v470_v6 = vld [vmem:[%s1370_s5 + $0x40] sm:$0xff]  ;;  %v485_v22 = vld [vmem:[%s1370_s5 + $0xb8] sm:$0xff]  ;;  %v554_v32 = vld [vmem:[%s1371_s11 + $0x50] sm:$0xff] }
  0x82   :  { %v98_v33 = vadd.f32 %v94_v17, %v88_v25  ;;  %v99_v34 = vadd.f32 %v95_v18, %v89_v26  ;;  %v100_v56 = vadd.f32 %v94_v17, %v90_v45  ;;  %v101_v57 = vadd.f32 %v95_v18, %v91_v46  ;;  %v487_v17 = vld [vmem:[%s1370_s5 + $0xc8] sm:$0xff]  ;;  %v486_v18 = vld [vmem:[%s1370_s5 + $0xc0] sm:$0xff]  ;;  %v468_v25 = vld [vmem:[%s1370_s5 + $0x30] sm:$0xff] }
  0x83   :  { %v134_v14 = vadd.f32 %v130_v5, %v124_v2  ;;  %v135_v15 = vadd.f32 %v131_v3, %v125_v4  ;;  %v126_v19 = vadd.f32 %v122_v10, %v112_v11  ;;  %v127_v20 = vadd.f32 %v123_v13, %v113_v12  ;;  %v484_v26 = vld [vmem:[%s1370_s5 + $0xb0] sm:$0xff]  ;;  %v465_v29 = vld [vmem:[%s1370_s5 + $0x18] sm:$0xff]  ;;  %v479_v45 = vld [vmem:[%s1370_s5 + $0x88] sm:$0xff] }
  0x84   :  { %224 = vmatmul.f32.vlgmr.msra.gmra.mxu0 %v98_v33  ;;  %247 = vmatmul.f32.vlgmr.msra.gmra.mxu1 %v99_v34  ;;  %v570_v44 = vld [vmem:[%s1371_s11 + $0xd0] sm:$0xff]  ;;  %v548_v51 = vld [vmem:[%s1371_s11 + $0x20] sm:$0xff]  ;;  %v567_v52 = vld [vmem:[%s1371_s11 + $0xb8] sm:$0xff] }
  0x85   :  { %270 = vmatmul.f32.vlgmr.msra.gmra.mxu2 %v98_v33  ;;  %293 = vmatmul.f32.vlgmr.msra.gmra.mxu3 %v99_v34  ;;  %v136_v23 = vadd.f32 %v130_v5, %v126_v19  ;;  %v137_v24 = vadd.f32 %v131_v3, %v127_v20  ;;  %v573_v33 = vld [vmem:[%s1371_s11 + $0xe8] sm:$0xff]  ;;  %v550_v46 = vld [vmem:[%s1371_s11 + $0x30] sm:$0xff] }
  0x86   :  { %498 = vmatpush.msra.mxu0 %v477_v35  ;;  %521 = vmatpush.msra.mxu1 %v493_v36  ;;  %v463_v34 = vld [vmem:[%s1370_s5 + $0x8] sm:$0xff]  ;;  %v482_v35 = vld [vmem:[%s1370_s5 + $0xa0] sm:$0xff]  ;;  %v566_v54 = vld [vmem:[%s1371_s11 + $0xb0] sm:$0xff] }
  0x87   :  { %580 = vmatpush.msra.mxu2 %v559_v39  ;;  %603 = vmatpush.msra.mxu3 %v575_v43  ;;  %v553_v36 = vld [vmem:[%s1371_s11 + $0x48] sm:$0xff]  ;;  %v481_v39 = vld [vmem:[%s1370_s5 + $0x98] sm:$0xff]  ;;  %v546_v55 = vld [vmem:[%s1371_s11 + $0x10] sm:$0xff] }
  0x88   :  { %499 = vmatpush.msra.mxu0 %v476_v41  ;;  %522 = vmatpush.msra.mxu1 %v492_v42  ;;  %v571_v41 = vld [vmem:[%s1371_s11 + $0xd8] sm:$0xff]  ;;  %v480_v42 = vld [vmem:[%s1370_s5 + $0x90] sm:$0xff]  ;;  %v561_v62 = vld [vmem:[%s1371_s11 + $0x88] sm:$0xff] }
  0x89   :  { %581 = vmatpush.msra.mxu2 %v558_v47  ;;  %604 = vmatpush.msra.mxu3 %v574_v48  ;;  %v551_v43 = vld [vmem:[%s1371_s11 + $0x38] sm:$0xff]  ;;  %v569_v47 = vld [vmem:[%s1371_s11 + $0xc8] sm:$0xff]  ;;  %v478_v48 = vld [vmem:[%s1370_s5 + $0x80] sm:$0xff] }
  0x8a   :  { %500 = vmatpush.msra.mxu0 %v475_v49  ;;  %523 = vmatpush.msra.mxu1 %v491_v50  ;;  %v549_v49 = vld [vmem:[%s1371_s11 + $0x28] sm:$0xff]  ;;  %v568_v50 = vld [vmem:[%s1371_s11 + $0xc0] sm:$0xff]  ;;  %v562_v61 = vld [vmem:[%s1371_s11 + $0x90] sm:$0xff] }
  0x8b   :  { %582 = vmatpush.msra.mxu2 %v557_v53  ;;  %605 = vmatpush.msra.mxu3 %v573_v33  ;;  %v547_v53 = vld [vmem:[%s1371_s11 + $0x18] sm:$0xff] }
  0x8c   :  { %227 = vmatmul.f32.gmra.mxu0 %v100_v56  ;;  %250 = vmatmul.f32.gmra.mxu1 %v101_v57 }
  0x8d   :  { %273 = vmatmul.f32.gmra.mxu2 %v100_v56  ;;  %296 = vmatmul.f32.gmra.mxu3 %v101_v57  ;;  %v565_v56 = vld [vmem:[%s1371_s11 + $0xa8] sm:$0xff] }
  0x8e   :  { %501 = vmatpush.msra.mxu0 %v474_v59  ;;  %524 = vmatpush.msra.mxu1 %v490_v60  ;;  %v545_v57 = vld [vmem:[%s1371_s11 + $0x8] sm:$0xff]  ;;  %v544_v59 = vld [vmem:[%s1371_s11] sm:$0xff]  ;;  %v563_v60 = vld [vmem:[%s1371_s11 + $0x98] sm:$0xff] }
  0x8f   :  { %583 = vmatpush.msra.mxu2 %v556_v63  ;;  %606 = vmatpush.msra.mxu3 %v572_v37  ;;  %v202_v63 = vld [vmem:[%s1374_s4] sm:$0x3] }
  0x90   :  { %502 = vmatpush.msra.mxu0 %v473_v0  ;;  %525 = vmatpush.msra.mxu1 %v489_v1  ;;  %v560_v0 = vld [vmem:[%s1371_s11 + $0x80] sm:$0xff]  ;;  %v204_v1 = vperm.slane %v202_v63, 0 }
  0x91   :  { %584 = vmatpush.msra.mxu2 %v555_v7  ;;  %607 = vmatpush.msra.mxu3 %v571_v41  ;;  %v205_v7 = vperm.slane %v202_v63, 1 }
  0x92   :  { %503 = vmatpush.msra.mxu0 %v472_v8  ;;  %526 = vmatpush.msra.mxu1 %v488_v9 }
  0x93   :  { %585 = vmatpush.msra.mxu2 %v554_v32  ;;  %608 = vmatpush.msra.mxu3 %v570_v44 }
  0x94   :  { %386 = vmatmul.f32.vlgmr.msrb.gmra.mxu0 %v134_v14  ;;  %409 = vmatmul.f32.vlgmr.msrb.gmra.mxu1 %v135_v15 }
  0x95   :  { %432 = vmatmul.f32.vlgmr.msrb.gmra.mxu2 %v134_v14  ;;  %455 = vmatmul.f32.vlgmr.msrb.gmra.mxu3 %v135_v15  ;;  %v364_v15 = vld [vmem:[%s1375_s10] sm:$0x3] }
  0x96   :  { %504 = vmatpush.msra.mxu0 %v471_v16  ;;  %527 = vmatpush.msra.mxu1 %v487_v17  ;;  %v366_v17 = vperm.slane %v364_v15, 0 }
  0x97   :  { %586 = vmatpush.msra.mxu2 %v553_v36  ;;  %609 = vmatpush.msra.mxu3 %v569_v47 }
  0x98   :  { %505 = vmatpush.msra.mxu0 %v470_v6  ;;  %528 = vmatpush.msra.mxu1 %v486_v18 }
  0x99   :  { %587 = vmatpush.msra.mxu2 %v552_v40  ;;  %610 = vmatpush.msra.mxu3 %v568_v50 }
  0x9a   :  { %506 = vmatpush.msra.mxu0 %v469_v21  ;;  %529 = vmatpush.msra.mxu1 %v485_v22 }
  0x9b   :  { %588 = vmatpush.msra.mxu2 %v551_v43  ;;  %611 = vmatpush.msra.mxu3 %v567_v52 }
  0x9c   :  { %389 = vmatmul.f32.gmra.mxu0 %v136_v23  ;;  %412 = vmatmul.f32.gmra.mxu1 %v137_v24 }
  0x9d   :  { %435 = vmatmul.f32.gmra.mxu2 %v136_v23  ;;  %458 = vmatmul.f32.gmra.mxu3 %v137_v24 }
  0x9e   :  { %507 = vmatpush.msra.mxu0 %v468_v25  ;;  %530 = vmatpush.msra.mxu1 %v484_v26  ;;  %v367_v25 = vperm.slane %v364_v15, 1 }
  0x9f   :  { %589 = vmatpush.msra.mxu2 %v550_v46  ;;  %612 = vmatpush.msra.mxu3 %v566_v54 }
  0xa0   :  { %508 = vmatpush.msra.mxu0 %v467_v27  ;;  %531 = vmatpush.msra.mxu1 %v483_v31 }
  0xa1   :  { %590 = vmatpush.msra.mxu2 %v549_v49  ;;  %613 = vmatpush.msra.mxu3 %v565_v56 }
  0xa2   :  { %509 = vmatpush.msra.mxu0 %v466_v28  ;;  %532 = vmatpush.msra.mxu1 %v482_v35 }
  0xa3   :  { %591 = vmatpush.msra.mxu2 %v548_v51  ;;  %614 = vmatpush.msra.mxu3 %v564_v58 }
  0xa4   :  { %510 = vmatpush.msra.mxu0 %v465_v29  ;;  %533 = vmatpush.msra.mxu1 %v481_v39  ;;  %v645_v39 = vld [vmem:[%s1373_s6] ss:$0 sm:$0xff] }
  0xa5   :  { %592 = vmatpush.msra.mxu2 %v547_v53  ;;  %615 = vmatpush.msra.mxu3 %v563_v60 }
  0xa6   :  { %511 = vmatpush.msra.mxu0 %v464_v30  ;;  %534 = vmatpush.msra.mxu1 %v480_v42 }
  0xa7   :  { %593 = vmatpush.msra.mxu2 %v546_v55  ;;  %616 = vmatpush.msra.mxu3 %v562_v61 }
  0xa8   :  { %512 = vmatpush.msra.mxu0 %v463_v34  ;;  %535 = vmatpush.msra.mxu1 %v479_v45 }
  0xa9   :  { %594 = vmatpush.msra.mxu2 %v545_v57  ;;  %617 = vmatpush.msra.mxu3 %v561_v62 }
  0xaa   :  { %513 = vmatpush.msra.mxu0 %v462_v38  ;;  %536 = vmatpush.msra.mxu1 %v478_v48  ;;  %v646_v48 = vld [vmem:[%s1376_s12] ss:$0 sm:$0xff] }
  0xab   :  { %595 = vmatpush.msra.mxu2 %v544_v59  ;;  %618 = vmatpush.msra.mxu3 %v560_v0 }
 0x101   :  { %v225_v2 = vpop.f32.mrf.mxu0  ;;  %v248_v4 = vpop.f32.mrf.mxu1 }
 0x102   :  { %v226_v5 = vadd.f32 %v225_v2, %v204_v1 }
 0x104   :  { %v249_v3 = vadd.f32 %v248_v4, %v226_v5 }
 0x106   :  { %514 = vmatmul.f32.vlgmr.msra.gmra.mxu0 %v249_v3 }
 0x108   :  { %v271_v8 = vpop.f32.mrf.mxu2  ;;  %v294_v9 = vpop.f32.mrf.mxu3 }
 0x109   :  { %v272_v10 = vadd.f32 %v271_v8, %v205_v7  ;;  %v228_v11 = vpop.f32.mrf.mxu0  ;;  %v251_v12 = vpop.f32.mrf.mxu1 }
 0x10a   :  { %v229_v13 = vadd.f32 %v228_v11, %v204_v1 }
 0x10b   :  { %v295_v14 = vadd.f32 %v294_v9, %v272_v10 }
 0x10c   :  { %v252_v16 = vadd.f32 %v251_v12, %v229_v13 }
 0x10d   :  { %537 = vmatmul.f32.vlgmr.msra.gmra.mxu1 %v295_v14 }
 0x10e   :  { %517 = vmatmul.f32.gmra.mxu0 %v252_v16 }
 0x110   :  { %v274_v6 = vpop.f32.mrf.mxu2  ;;  %v297_v18 = vpop.f32.mrf.mxu3 }
 0x111   :  { %v275_v19 = vadd.f32 %v274_v6, %v205_v7  ;;  %v387_v20 = vpop.f32.mrf.mxu0  ;;  %v410_v21 = vpop.f32.mrf.mxu1 }
 0x112   :  { %v388_v22 = vadd.f32 %v387_v20, %v366_v17 }
 0x113   :  { %v298_v23 = vadd.f32 %v297_v18, %v275_v19 }
 0x114   :  { %v411_v24 = vadd.f32 %v410_v21, %v388_v22 }
 0x115   :  { %540 = vmatmul.f32.gmra.mxu1 %v298_v23 }
 0x116   :  { %596 = vmatmul.f32.vlgmr.msra.gmra.mxu2 %v411_v24 }
 0x118   :  { %v433_v26 = vpop.f32.mrf.mxu2  ;;  %v456_v27 = vpop.f32.mrf.mxu3 }
 0x119   :  { %v434_v28 = vadd.f32 %v433_v26, %v367_v25  ;;  %v390_v29 = vpop.f32.mrf.mxu0  ;;  %v413_v32 = vpop.f32.mrf.mxu1 }
 0x11a   :  { %v391_v30 = vadd.f32 %v390_v29, %v366_v17 }
 0x11b   :  { %v457_v31 = vadd.f32 %v456_v27, %v434_v28 }
 0x11c   :  { %v414_v33 = vadd.f32 %v413_v32, %v391_v30 }
 0x11d   :  { %619 = vmatmul.f32.vlgmr.msra.gmra.mxu3 %v457_v31 }
 0x11e   :  { %599 = vmatmul.f32.gmra.mxu2 %v414_v33 }
 0x120   :  { %v436_v34 = vpop.f32.mrf.mxu2  ;;  %v459_v36 = vpop.f32.mrf.mxu3 }
 0x121   :  { %v437_v35 = vadd.f32 %v436_v34, %v367_v25 }
 0x123   :  { %v460_v37 = vadd.f32 %v459_v36, %v437_v35 }
 0x125   :  { %622 = vmatmul.f32.gmra.mxu3 %v460_v37 }
 0x183   :  { %v515_v38 = vpop.f32.mrf.mxu0 }
 0x184   :  { %v516_v40 = vadd.f32 %v645_v39, %v515_v38 }
 0x18a   :  { %v538_v41 = vpop.f32.mrf.mxu1 }
 0x18b   :  { %v539_v42 = vadd.f32 %v538_v41, %v516_v40  ;;  %v518_v43 = vpop.f32.mrf.mxu0 }
 0x18c   :  { %v519_v44 = vadd.f32 %v645_v39, %v518_v43 }
 0x18d   :  { %627 = vst.msk [vmem:[%s1377_s13] sm:$0xff] %vm626_vm0, %v539_v42 }
 0x192   :  { %v541_v45 = vpop.f32.mrf.mxu1 }
 0x193   :  { %v542_v46 = vadd.f32 %v541_v45, %v519_v44 }
 0x195   :  { %628 = vst.msk [vmem:[%s1377_s13 + $0x8] sm:$0xff] %vm626_vm0, %v542_v46 }
 0x199   :  { %v597_v47 = vpop.f32.mrf.mxu2 }
 0x19a   :  { %v598_v49 = vadd.f32 %v646_v48, %v597_v47 }
 0x1a0   :  { %v620_v50 = vpop.f32.mrf.mxu3 }
 0x1a1   :  { %v621_v51 = vadd.f32 %v620_v50, %v598_v49  ;;  %v600_v52 = vpop.f32.mrf.mxu2 }
 0x1a2   :  { %v601_v53 = vadd.f32 %v646_v48, %v600_v52 }
 0x1a3   :  { %629 = vst.msk [vmem:[%s1378_s14] sm:$0xff] %vm626_vm0, %v621_v51 }
 0x1a8   :  { %v623_v54 = vpop.f32.mrf.mxu3 }
 0x1a9   :  { %v624_v55 = vadd.f32 %v623_v54, %v601_v53 }
 0x1ab   :  { %630 = vst.msk [vmem:[%s1378_s14 + $0x8] sm:$0xff] %vm626_vm0, %v624_v55 }

</bundles_post_ra>
